<compile_context>
chip_gen: v5e
topology: v5e:2x2
jax: 0.10.0
libtpu: 0.0.40
codegen_flags: <defaults>
</compile_context>

<pallas_src>
import functools

import jax
import jax.numpy as jnp
from jax.experimental import pallas as pl
from jax.experimental.pallas import tpu as pltpu


# ---------------------------------------------------------------------------
# Small helpers
# ---------------------------------------------------------------------------
def _round_up(x, m):
    return (x + m - 1) // m * m


def _vmem_capacity_bytes():
    try:
        cap = int(pltpu.get_tpu_info().vmem_capacity_bytes)
        if cap > 0:
            return min(max(cap, 32 << 20), 128 << 20)
    except Exception:
        pass
    return 64 << 20  # conservative: v7x per-TensorCore VMEM


def _has_bf16_eup():
    """bf16 transcendentals exist on v6e / v7x; not on v5 and older."""
    try:
        kind = jax.devices()[0].device_kind.lower()
    except Exception:
        return False
    return not any(tag in kind for tag in ("v2", "v3", "v4", "v5"))


def _vmem_step_bytes(block_b, hw, c, tq, c8_pad, c2_pad, use_bf16_exp):
    """Rough per-grid-step live-bytes estimate (double-buffered I/O + transients)."""
    f32, bf16 = 4, 2
    cpg = c8_pad + c2_pad
    b = 0
    b += 2 * block_b * hw * c * f32                    # x block (double-buffered)
    b += 2 * block_b * tq * c * f32                    # out block (double-buffered)
    b += block_b * (hw // 4) * cpg * bf16              # pooled [phi|g] scratch
    b += 2 * (c * c8_pad + c * cpg + c2_pad * c) * bf16  # weights
    b += block_b * hw * cpg * f32                      # q==0 projection transient
    b += block_b * tq * c8_pad * f32                   # theta tile
    b += block_b * tq * (hw // 4) * (f32 + (bf16 if use_bf16_exp else f32))  # s + e
    b += block_b * tq * c2_pad * f32                   # ov tile
    return b


def _pick_tq(hw, cap=512):
    """Largest multiple-of-8 divisor of hw <= cap, preferring >= 2 q-steps."""
    divs = [d for d in range(8, hw + 1, 8) if hw % d == 0]
    if not divs:
        return hw  # tiny hw: full extent (block dim == array dim is always legal)
    good = [d for d in divs if d <= cap] or [min(divs)]
    multi = [d for d in good if hw // d >= 2]
    return max(multi) if multi else max(good)


def _pick_block_b(B, fits):
    """Largest divisor of B fitting VMEM, keeping >= min(4, B) batch grid steps."""
    divs = [d for d in range(1, B + 1) if B % d == 0]
    want_steps = min(4, B)  # >= 2 per TensorCore on dual-TC chips
    ok = [d for d in divs if fits(d) and B // d >= want_steps]
    if not ok:
        ok = [d for d in divs if fits(d)]
    return max(ok) if ok else 1


# ---------------------------------------------------------------------------
# Pallas kernel
# ---------------------------------------------------------------------------
def attention_kernel(x_ref, wt_ref, wpg_ref, wo_ref, gamma_ref, out_ref, pooled_ref,
                     *, hw, tq, c8_pad, c2_pad, use_bf16_exp):
    bt = x_ref.shape[0]
    c = x_ref.shape[-1]
    q = pl.program_id(1)
    gamma = gamma_ref[0]

    # ---- once per batch block: [phi | g] projection + joint 2x2 max pool ----
    @pl.when(q == 0)
    def _():
        x_full = x_ref[...].reshape(bt * hw, c).astype(jnp.bfloat16)
        pg = jnp.dot(x_full, wpg_ref[...],
                     preferred_element_type=jnp.float32)         # (Bt*HW, cpg)
        # rows are 2x2-window-major: every 4 consecutive rows = one pool window
        pooled = jnp.max(pg.reshape(bt * hw // 4, 4, c8_pad + c2_pad), axis=1)
        pooled_ref[...] = pooled.reshape(
            bt, hw // 4, c8_pad + c2_pad).astype(pooled_ref.dtype)

    # ---- per query tile ----
    q0 = pl.multiple_of(q * tq, tq)
    x_tile = x_ref[:, pl.ds(q0, tq), :]                          # (Bt, tq, C) f32

    theta = jnp.dot(x_tile.reshape(bt * tq, c).astype(jnp.bfloat16), wt_ref[...],
                    preferred_element_type=jnp.float32)          # (Bt*tq, c8_pad)
    theta = theta.reshape(bt, tq, c8_pad)

    phi_p = pooled_ref[..., :c8_pad]                             # (Bt, HW/4, c8_pad) bf16
    g_p = pooled_ref[..., c8_pad:]                               # (Bt, HW/4, c2_pad) bf16

    # Attention scores; softmax normalization deferred.
    s = jnp.einsum('bqd,bkd->bqk', theta.astype(jnp.bfloat16), phi_p,
                   preferred_element_type=jnp.float32)           # (Bt, tq, HW/4)
    s = s - jnp.max(s, axis=-1, keepdims=True)
    if use_bf16_exp:
        e = jnp.exp(s.astype(jnp.bfloat16))                      # bf16 EUP (v6e/v7x)
        l = jnp.sum(e.astype(jnp.float32), axis=-1, keepdims=True)
    else:
        ef = jnp.exp(s)
        l = jnp.sum(ef, axis=-1, keepdims=True)
        e = ef.astype(jnp.bfloat16)

    # Unnormalized weighted sum of values; fold 1/sum and gamma into one scale.
    ov = jnp.einsum('bqk,bkd->bqd', e, g_p,
                    preferred_element_type=jnp.float32)          # (Bt, tq, c2_pad)
    scale = gamma * pl.reciprocal(l, approx=True)
    ov = ov * scale

    # Output projection + residual (residual stays f32).
    o = jnp.dot(ov.reshape(bt * tq, c2_pad).astype(jnp.bfloat16), wo_ref[...],
                preferred_element_type=jnp.float32)              # (Bt*tq, C)
    out_ref[...] = o.reshape(bt, tq, c) + x_tile


# ---------------------------------------------------------------------------
# Layout helpers (single composite permutation each way — one copy pass)
# ---------------------------------------------------------------------------
def to_kernel_layout(x):
    B, C, H, W = x.shape
    t = x.reshape(B, C, H // 2, 2, W // 2, 2)
    t = jnp.transpose(t, (0, 2, 4, 3, 5, 1))         # B, H/2, W/2, 2, 2, C
    return t.reshape(B, H * W, C)


def from_kernel_layout(y, H, W):
    B, HW, C = y.shape
    t = y.reshape(B, H // 2, W // 2, 2, 2, C)
    t = jnp.transpose(t, (0, 5, 1, 3, 2, 4))          # B, C, H/2, 2, W/2, 2
    return t.reshape(B, C, H, W)


# ---------------------------------------------------------------------------
# Wrapper
# ---------------------------------------------------------------------------
def attention_forward(x, wt, wp, wg, wo, gamma, *, block_b=None, tq=None):
    """x: (B, C, H, W) NCHW.  w*: (Cin, Cout) 1x1-conv matrices.  gamma: scalar."""
    B, C, H, W = x.shape
    assert H % 2 == 0 and W % 2 == 0, "max_pool2d(2,2) path assumes even H, W"
    HW = H * W
    C8, C2 = C // 8, C // 2
    c8_pad = _round_up(C8, 128)
    c2_pad = _round_up(C2, 128)
    cpg = c8_pad + c2_pad

    use_bf16_exp = _has_bf16_eup()

    cap = _vmem_capacity_bytes()
    budget = int(0.45 * cap)

    if tq is None:
        tq = _pick_tq(HW)
    assert HW % tq == 0

    def fits(bb, t=None):
        t = tq if t is None else t
        return _vmem_step_bytes(bb, HW, C, t, c8_pad, c2_pad, use_bf16_exp) <= budget

    if block_b is None:
        # Shrink the query tile first if even one batch element does not fit.
        while not fits(1, tq) and tq >= 16:
            tq //= 2
        block_b = _pick_block_b(B, fits)
    assert B % block_b == 0 and HW % tq == 0

    est = _vmem_step_bytes(block_b, HW, C, tq, c8_pad, c2_pad, use_bf16_exp)
    vmem_limit = int(min(int(0.9 * cap), max(32 << 20, int(1.4 * est) + (2 << 20))))

    # Window-major channels-last activations; lane-aligned padded weights.
    x_l = to_kernel_layout(x).astype(jnp.float32)                 # (B, HW, C)
    wt_p = jnp.pad(wt, ((0, 0), (0, c8_pad - C8))).astype(jnp.bfloat16)
    wpg_p = jnp.concatenate(
        [jnp.pad(wp, ((0, 0), (0, c8_pad - C8))),
         jnp.pad(wg, ((0, 0), (0, c2_pad - C2)))], axis=1).astype(jnp.bfloat16)
    wo_p = jnp.pad(wo, ((0, c2_pad - C2), (0, 0))).astype(jnp.bfloat16)
    gamma_arr = jnp.asarray(gamma, jnp.float32).reshape(1)

    kernel = functools.partial(attention_kernel, hw=HW, tq=tq,
                               c8_pad=c8_pad, c2_pad=c2_pad,
                               use_bf16_exp=use_bf16_exp)

    out_l = pl.pallas_call(
        kernel,
        out_shape=jax.ShapeDtypeStruct((B, HW, C), jnp.float32),
        grid=(B // block_b, HW // tq),
        in_specs=[
            # x stays resident across the whole q sweep (block index fixed in q).
            pl.BlockSpec((block_b, HW, C), lambda b, q: (b, 0, 0)),
            pl.BlockSpec((C, c8_pad), lambda b, q: (0, 0)),
            pl.BlockSpec((C, cpg), lambda b, q: (0, 0)),
            pl.BlockSpec((c2_pad, C), lambda b, q: (0, 0)),
            pl.BlockSpec(memory_space=pltpu.MemorySpace.SMEM),
        ],
        out_specs=pl.BlockSpec((block_b, tq, C), lambda b, q: (b, q, 0)),
        scratch_shapes=[pltpu.VMEM((block_b, HW // 4, cpg), jnp.bfloat16)],
        compiler_params=pltpu.CompilerParams(
            dimension_semantics=("parallel", "arbitrary"),
            vmem_limit_bytes=vmem_limit),
    )(x_l, wt_p, wpg_p, wo_p, gamma_arr)

    return from_kernel_layout(out_l, H, W)


# ---------------------------------------------------------------------------
# Pure-JAX f32 reference (mirrors the PyTorch forward exactly, in NCHW)
# ---------------------------------------------------------------------------
def ref_attention(x, wt, wp, wg, wo, gamma):
    B, C, H, W = x.shape

    def conv1x1(t, w):  # (B,Cin,H,W) x (Cin,Cout) -> (B,Cout,H,W)
        return jnp.einsum('bchw,co->bohw', t, w)

    def pool(t):
        b, c, h, w = t.shape
        t = t.reshape(b, c, h // 2, 2, w // 2, 2)
        return jnp.max(t, axis=(3, 5))

    theta = conv1x1(x, wt)
    phi = pool(conv1x1(x, wp))
    g = pool(conv1x1(x, wg))
    theta = theta.reshape(B, C // 8, H * W)
    phi = phi.reshape(B, C // 8, H * W // 4)
    g = g.reshape(B, C // 2, H * W // 4)
    beta = jax.nn.softmax(jnp.einsum('bcn,bcm->bnm', theta, phi), axis=-1)
    o = jnp.einsum('bcm,bnm->bcn', g, beta).reshape(B, C // 2, H, W)
    o = conv1x1(o, wo)
    return gamma * o + x


if __name__ == "__main__":
    B, C, H, W = 4, 32, 8, 8   # ch=32 -> theta/phi: 4 ch, g: 16 ch

    key = jax.random.PRNGKey(0)
    k = jax.random.split(key, 5)
    x = jax.random.normal(k[0], (B, C, H, W), jnp.float32)
    wt = 0.1 * jax.random.normal(k[1], (C, C // 8), jnp.float32)
    wp = 0.1 * jax.random.normal(k[2], (C, C // 8), jnp.float32)
    wg = 0.1 * jax.random.normal(k[3], (C, C // 2), jnp.float32)
    wo = 0.1 * jax.random.normal(k[4], (C // 2, C), jnp.float32)
    # PyTorch initializes gamma to 0.0 (output == x); use 0.5 so the attention
    # path is actually exercised numerically.
    gamma = jnp.float32(0.5)

    out = attention_forward(x, wt, wp, wg, wo, gamma)
    out = jax.block_until_ready(out)

    ref = ref_attention(x, wt, wp, wg, wo, gamma)
    assert out.shape == x.shape and out.dtype == x.dtype
    # bf16 MXU operands (+ bf16 exp on v6e/v7x) + approx reciprocal vs f32 ref.
    err = float(jnp.max(jnp.abs(out - ref)))
    assert err < 3e-2, err

    print("KERNEL_OK")
</pallas_src>

<mosaic_0001>
module attributes {stable_mosaic.version = 11 : i64} {
  func.func @attention_kernel(%arg0: i32, %arg1: i32, %arg2: memref<1x64x32xf32, #tpu.memory_space<vmem>>, %arg3: memref<32x128xbf16, #tpu.memory_space<vmem>>, %arg4: memref<32x256xbf16, #tpu.memory_space<vmem>>, %arg5: memref<128x32xbf16, #tpu.memory_space<vmem>>, %arg6: memref<1xf32, #tpu.memory_space<smem>>, %arg7: memref<1x32x32xf32, #tpu.memory_space<vmem>>, %arg8: memref<1x16x256xbf16, #tpu.memory_space<vmem>>) attributes {dimension_semantics = [#tpu.dimension_semantics<parallel>, #tpu.dimension_semantics<arbitrary>], iteration_bounds = array<i64: 4, 2>, scalar_prefetch = 0 : i64, scratch_operands = 1 : i64, tpu.core_type = #tpu.core_type<tc>, window_params = [{transform_indices = @transform_0, window_bounds = array<i64: 1, 64, 32>}, {pipeline_mode = #tpu.pipeline_mode<synchronous>, transform_indices = @transform_1, window_bounds = array<i64: 32, 128>}, {pipeline_mode = #tpu.pipeline_mode<synchronous>, transform_indices = @transform_2, window_bounds = array<i64: 32, 256>}, {pipeline_mode = #tpu.pipeline_mode<synchronous>, transform_indices = @transform_3, window_bounds = array<i64: 128, 32>}, {transform_indices = @transform_4, window_bounds = array<i64: 1>}, {transform_indices = @transform_5, window_bounds = array<i64: 1, 32, 32>}]} {
    %c0 = arith.constant 0 : index
    %0 = memref.load %arg6[%c0] : memref<1xf32, #tpu.memory_space<smem>>
    %c0_i32 = arith.constant 0 : i32
    %1 = arith.cmpi eq, %arg1, %c0_i32 : i32
    %2 = arith.extui %1 : i1 to i32
    %c0_i32_0 = arith.constant 0 : i32
    %3 = arith.cmpi ne, %2, %c0_i32_0 : i32
    scf.if %3 {
      %c0_20 = arith.constant 0 : index
      %c0_21 = arith.constant 0 : index
      %c0_22 = arith.constant 0 : index
      %39 = vector.load %arg2[%c0_20, %c0_21, %c0_22] : memref<1x64x32xf32, #tpu.memory_space<vmem>>, vector<1x64x32xf32>
      %40 = vector.shape_cast %39 : vector<1x64x32xf32> to vector<64x32xf32>
      %41 = arith.truncf %40 : vector<64x32xf32> to vector<64x32xbf16>
      %c0_23 = arith.constant 0 : index
      %c0_24 = arith.constant 0 : index
      %42 = vector.load %arg4[%c0_23, %c0_24] : memref<32x256xbf16, #tpu.memory_space<vmem>>, vector<32x256xbf16>
      %cst_25 = arith.constant dense<0.000000e+00> : vector<64x256xf32>
      %43 = tpu.matmul %41, %42, %cst_25 {dimension_numbers = #tpu.dot_dimension_numbers<[1], [0], [0], [1], [0, 0, 1, 1], [], []>} : vector<64x32xbf16>, vector<32x256xbf16>, vector<64x256xf32> -> vector<64x256xf32>
      %44 = vector.shape_cast %43 : vector<64x256xf32> to vector<16x4x256xf32>
      %cst_26 = arith.constant dense<0xFF800000> : vector<16x256xf32>
      %45 = vector.multi_reduction <maximumf>, %44, %cst_26 [1] : vector<16x4x256xf32> to vector<16x256xf32>
      %46 = vector.shape_cast %45 : vector<16x256xf32> to vector<1x16x256xf32>
      %47 = arith.truncf %46 : vector<1x16x256xf32> to vector<1x16x256xbf16>
      %c0_27 = arith.constant 0 : index
      %c0_28 = arith.constant 0 : index
      %c0_29 = arith.constant 0 : index
      %48 = vector.load %arg8[%c0_27, %c0_28, %c0_29] : memref<1x16x256xbf16, #tpu.memory_space<vmem>>, vector<1x16x256xbf16>
      tpu.vector_store %arg8[%c0_27, %c0_28, %c0_29], %47 {strides = array<i32>} : memref<1x16x256xbf16, #tpu.memory_space<vmem>>, vector<1x16x256xbf16>,
    } else {
    }
    %c32_i32 = arith.constant 32 : i32
    %4 = arith.muli %arg1, %c32_i32 : i32
    %5 = tpu.assume_multiple %4, 32 : i32
    %c0_1 = arith.constant 0 : index
    %6 = arith.index_cast %5 : i32 to index
    %c0_2 = arith.constant 0 : index
    %7 = vector.load %arg2[%c0_1, %6, %c0_2] : memref<1x64x32xf32, #tpu.memory_space<vmem>>, vector<1x32x32xf32>
    %8 = vector.shape_cast %7 : vector<1x32x32xf32> to vector<32x32xf32>
    %9 = arith.truncf %8 : vector<32x32xf32> to vector<32x32xbf16>
    %c0_3 = arith.constant 0 : index
    %c0_4 = arith.constant 0 : index
    %10 = vector.load %arg3[%c0_3, %c0_4] : memref<32x128xbf16, #tpu.memory_space<vmem>>, vector<32x128xbf16>
    %cst = arith.constant dense<0.000000e+00> : vector<32x128xf32>
    %11 = tpu.matmul %9, %10, %cst {dimension_numbers = #tpu.dot_dimension_numbers<[1], [0], [0], [1], [0, 0, 1, 1], [], []>} : vector<32x32xbf16>, vector<32x128xbf16>, vector<32x128xf32> -> vector<32x128xf32>
    %12 = vector.shape_cast %11 : vector<32x128xf32> to vector<1x32x128xf32>
    %c0_5 = arith.constant 0 : index
    %c0_6 = arith.constant 0 : index
    %c0_7 = arith.constant 0 : index
    %13 = vector.load %arg8[%c0_5, %c0_6, %c0_7] : memref<1x16x256xbf16, #tpu.memory_space<vmem>>, vector<1x16x128xbf16>
    %c0_8 = arith.constant 0 : index
    %c0_9 = arith.constant 0 : index
    %c128 = arith.constant 128 : index
    %14 = vector.load %arg8[%c0_8, %c0_9, %c128] : memref<1x16x256xbf16, #tpu.memory_space<vmem>>, vector<1x16x128xbf16>
    %15 = arith.truncf %12 : vector<1x32x128xf32> to vector<1x32x128xbf16>
    "tpu.trace_start"() <{level = 10 : i32, message = "bqd,bkd->bqk"}> : () -> ()
    %cst_10 = arith.constant dense<0.000000e+00> : vector<1x32x16xf32>
    %16 = tpu.matmul %15, %13, %cst_10 {dimension_numbers = #tpu.dot_dimension_numbers<[2], [2], [1], [1], [0, 0, 0, 1, 1, 1], [0], [0]>} : vector<1x32x128xbf16>, vector<1x16x128xbf16>, vector<1x32x16xf32> -> vector<1x32x16xf32>
    "tpu.trace_stop"() : () -> ()
    %cst_11 = arith.constant dense<0xFF800000> : vector<1x32xf32>
    %17 = vector.multi_reduction <maximumf>, %16, %cst_11 [2] : vector<1x32x16xf32> to vector<1x32xf32>
    %18 = vector.shape_cast %17 : vector<1x32xf32> to vector<1x32x1xf32>
    %19 = vector.broadcast %18 : vector<1x32x1xf32> to vector<1x32x16xf32>
    %20 = arith.subf %16, %19 : vector<1x32x16xf32>
    %21 = arith.truncf %20 : vector<1x32x16xf32> to vector<1x32x16xbf16>
    %22 = math.exp %21 : vector<1x32x16xbf16>
    %23 = arith.extf %22 : vector<1x32x16xbf16> to vector<1x32x16xf32>
    %cst_12 = arith.constant dense<0.000000e+00> : vector<1x32xf32>
    %24 = vector.multi_reduction <add>, %23, %cst_12 [2] : vector<1x32x16xf32> to vector<1x32xf32>
    %25 = vector.shape_cast %24 : vector<1x32xf32> to vector<1x32x1xf32>
    "tpu.trace_start"() <{level = 10 : i32, message = "bqk,bkd->bqd"}> : () -> ()
    %cst_13 = arith.constant dense<0.000000e+00> : vector<1x32x128xf32>
    %26 = tpu.matmul %22, %14, %cst_13 {dimension_numbers = #tpu.dot_dimension_numbers<[2], [1], [1], [2], [0, 0, 0, 1, 1, 2], [0], [0]>} : vector<1x32x16xbf16>, vector<1x16x128xbf16>, vector<1x32x128xf32> -> vector<1x32x128xf32>
    "tpu.trace_stop"() : () -> ()
    %27 = tpu.reciprocal %25 {approx = true} : vector<1x32x1xf32> -> vector<1x32x1xf32>
    %28 = vector.broadcast %0 : f32 to vector<1x32x1xf32>
    %29 = arith.mulf %28, %27 : vector<1x32x1xf32>
    %30 = vector.broadcast %29 : vector<1x32x1xf32> to vector<1x32x128xf32>
    %31 = arith.mulf %26, %30 : vector<1x32x128xf32>
    %32 = vector.shape_cast %31 : vector<1x32x128xf32> to vector<32x128xf32>
    %33 = arith.truncf %32 : vector<32x128xf32> to vector<32x128xbf16>
    %c0_14 = arith.constant 0 : index
    %c0_15 = arith.constant 0 : index
    %34 = vector.load %arg5[%c0_14, %c0_15] : memref<128x32xbf16, #tpu.memory_space<vmem>>, vector<128x32xbf16>
    %cst_16 = arith.constant dense<0.000000e+00> : vector<32x32xf32>
    %35 = tpu.matmul %33, %34, %cst_16 {dimension_numbers = #tpu.dot_dimension_numbers<[1], [0], [0], [1], [0, 0, 1, 1], [], []>} : vector<32x128xbf16>, vector<128x32xbf16>, vector<32x32xf32> -> vector<32x32xf32>
    %36 = vector.shape_cast %35 : vector<32x32xf32> to vector<1x32x32xf32>
    %37 = arith.addf %36, %7 : vector<1x32x32xf32>
    %c0_17 = arith.constant 0 : index
    %c0_18 = arith.constant 0 : index
    %c0_19 = arith.constant 0 : index
    %38 = vector.load %arg7[%c0_17, %c0_18, %c0_19] : memref<1x32x32xf32, #tpu.memory_space<vmem>>, vector<1x32x32xf32>
    tpu.vector_store %arg7[%c0_17, %c0_18, %c0_19], %37 {strides = array<i32>} : memref<1x32x32xf32, #tpu.memory_space<vmem>>, vector<1x32x32xf32>,
    return
  }
  func.func @transform_0(%arg0: i32, %arg1: i32) -> (i32, i32, i32) {
    %c0_i32 = arith.constant 0 : i32
    %c0_i32_0 = arith.constant 0 : i32
    %c0_i32_1 = arith.constant 0 : i32
    return %arg0, %c0_i32, %c0_i32_0 : i32, i32, i32
  }
  func.func @transform_1(%arg0: i32, %arg1: i32) -> (i32, i32) {
    %c0_i32 = arith.constant 0 : i32
    %c0_i32_0 = arith.constant 0 : i32
    %c0_i32_1 = arith.constant 0 : i32
    return %c0_i32, %c0_i32_0 : i32, i32
  }
  func.func @transform_2(%arg0: i32, %arg1: i32) -> (i32, i32) {
    %c0_i32 = arith.constant 0 : i32
    %c0_i32_0 = arith.constant 0 : i32
    %c0_i32_1 = arith.constant 0 : i32
    return %c0_i32, %c0_i32_0 : i32, i32
  }
  func.func @transform_3(%arg0: i32, %arg1: i32) -> (i32, i32) {
    %c0_i32 = arith.constant 0 : i32
    %c0_i32_0 = arith.constant 0 : i32
    %c0_i32_1 = arith.constant 0 : i32
    return %c0_i32, %c0_i32_0 : i32, i32
  }
  func.func @transform_4(%arg0: i32, %arg1: i32) -> i32 {
    %c0_i32 = arith.constant 0 : i32
    %c0_i32_0 = arith.constant 0 : i32
    return %c0_i32 : i32
  }
  func.func @transform_5(%arg0: i32, %arg1: i32) -> (i32, i32, i32) {
    %c0_i32 = arith.constant 0 : i32
    %c0_i32_0 = arith.constant 0 : i32
    return %arg0, %arg1, %c0_i32 : i32, i32, i32
  }
}

</mosaic_0001>

<bundles_post_ra>
// kernel: tpu_custom_call.1
= control target key start
LH: loop header
LB: loop body
LE: loop exit
PB: predicated region body
PF: predicated region fallthrough
CT: control target
= control target key end

     0   :  { %s1452_s20 = smov 0   ;;  %s1454_s21 = smov 0   ;;  %s1724_s0 = inlined_call_operand.vmem [shape: f32[4,64,32], index: 0, kind: input, shape index: {}]   ;;  %s1725_s1 = inlined_call_operand.vmem [shape: bf16[32,128], index: 1, kind: input, shape index: {}]   ;;  %s1726_s2 = inlined_call_operand.vmem [shape: bf16[32,256], index: 2, kind: input, shape index: {}]   ;;  %s1727_s3 = inlined_call_operand.vmem [shape: bf16[128,32], index: 3, kind: input, shape index: {}]   ;;  %s1728_s4 = inlined_call_operand.<no memory space> [shape: f32[1], index: 4, kind: input, shape index: {}]   ;;  %s1729_s5 = inlined_call_operand.vmem [shape: f32[4,64,32], index: 5, kind: output, shape index: {}]  }
   0x1   :  { %10 = sst [smem:[#allocation3]] %s1728_s4  ;;  %s1456_s22 = smov 0  }
   0x2   :  { %s1458_s23 = smov 0   ;;  %s1460_s24 = smov 0  }
   0x3 LB: > { %s25_s4 = sadd.s32 1, %s1409_s22  ;;  %s28_s25 = sadd.s32 1, %s1413_s23  ;;  %s1417_s24 = sphi %s1460_s24, %s16_s24   ;;  %s1413_s23 = sphi %s1458_s23, %s1733_s23   ;;  %s1409_s22 = sphi %s1456_s22, %s1732_s22   ;;  %s1405_s21 = sphi %s1454_s21, %s1731_s21   ;;  %s1401_s20 = sphi %s1452_s20, %s1730_s20  }
   0x4   : > { %p26_p0 = scmp.ge.s32.totalorder %s25_s4, 2  ;;  %p1208_p1 = scmp.ge.s32.totalorder %s1417_s24, 1 }
   0x5   : > { %p202_p2 = scmp.lt.s32.totalorder %s1417_s24, 9 }
   0x6   : > { %s1735_s4 = smov (%p26_p0, %s25_s4), 0  ;;  %s1737_s25 = smov (!%p26_p0, %s28_s25), %s1413_s23 }
   0x7   : > { %p203_p3 = pnand %p1208_p1, %p202_p2  ;;  %p30_p4 = scmp.ge.s32.totalorder %s1737_s25, 4 }
   0x8   : > { %p234_p5 = scmp.lt.s32.totalorder (!%p203_p3), %s1405_s21, 3  ;;  %s1211_s26 = sshll.u32 (!%p203_p3), %s1401_s20, 2 }
   0x9   : > { %s1739_s25 = smov (%p30_p4, %s1737_s25), 0  ;;  %206 = sbr.rel (%p203_p3) target bundleno = 984 (0x3d8), region = 40 }
   0xa   : > { %p242_p6 = scmp.lt.s32.totalorder (!%p203_p3), %s1211_s26, 7  ;;  %s1485_s27 = sld [smem:[#allocation3]] (!%p203_p3) }
   0xb   : > { %p1214_p7 = scmp.ne.s32.totalorder (!%p203_p3), %s1401_s20, 0 }
   0xe   : > { %s1741_s21 = smov (!%p234_p5, %s1405_s21), 3  ;;  %s1743_s26 = smov (!%p242_p6, %s1211_s26), 7 }
   0xf   : > { %s1294_s28 = sshll.u32 %s1741_s21, 6  ;;  %s1212_s29 = sshll.u32 %s1741_s21, 3 }
  0x10   : > { %s1490_s7 = scalar_lea.vmem %s1724_s0, %s1294_s28  ;;  %s245_s8 = sadd.s32 %s1212_s29, %s1743_s26 }
  0x11   : > { %s1213_s9 = sshll.u32 %s245_s8, 3  ;;  %254 = sbr.rel (%p1214_p7) target bundleno = 261 (0x105), region = 44 }
  0x12   : > { %s1495_s12 = scalar_lea.vmem %s1729_s5, %s1213_s9 }
  0x16   : > { %v1225_v0 = vld [vmem:[%s1726_s2 + $0x10] sm:$0xf]  ;;  %v1298_v1 = vld [vmem:[%s1726_s2 + $0x14] sm:$0xf0]  ;;  %v1297_v2 = vld [vmem:[%s1726_s2 + $0x14] sm:$0xf] }
  0x17   : > { %v1226_v3 = vor.u32 %v1298_v1, %v1225_v0  ;;  %v1227_v4 = vld [vmem:[%s1726_s2 + $0x18] sm:$0xf0]  ;;  %v1217_v5 = vld [vmem:[%s1726_s2] sm:$0xf]  ;;  %v1296_v6 = vld [vmem:[%s1726_s2 + $0x4] sm:$0xf0] }
  0x18   : > { %v1230_v7 = vor.u32 %v1297_v2, %v1227_v4  ;;  %v1295_v8 = vld [vmem:[%s1726_s2 + $0x4] sm:$0xf]  ;;  %v1219_v9 = vld [vmem:[%s1726_s2 + $0x8] sm:$0xf0]  ;;  %v1218_v10 = vor.u32 %v1296_v6, %v1217_v5  ;;  %vm291_vm0 = vcmask 261120   ;;  %v257_v18 = vld [vmem:[%s1490_s7 + $0x10] sm:$0xff] }
  0x19   : > { %310 = vmatpush.bf16.msra.mxu0 %v1226_v3  ;;  %1311 = vmatpush.bf16.msra.mxu2 %v1226_v3  ;;  %v255_v11 = vld [vmem:[%s1490_s7] sm:$0xff]  ;;  %v256_v12 = vld [vmem:[%s1490_s7 + $0x8] sm:$0xff]  ;;  %v1222_v13 = vor.u32 %v1295_v8, %v1219_v9  ;;  %v258_v19 = vld [vmem:[%s1490_s7 + $0x18] sm:$0xff]  ;;  %vm386_vm1 = vcmask 1043456   ;;  %vm782_vm2 = vcmask 1041409   ;;  %vm784_vm3 = vcmask 1042434  }
  0x1a   : > { %339 = vmatpush.bf16.msra.mxu1 %v1230_v7  ;;  %1313 = vmatpush.bf16.msra.mxu3 %v1230_v7  ;;  %v259_v14 = vld [vmem:[%s1490_s7 + $0x20] sm:$0xff]  ;;  %v260_v15 = vld [vmem:[%s1490_s7 + $0x28] sm:$0xff]  ;;  %v263_v16 = vpack.c.bf16 %v256_v12, %v255_v11  ;;  %v261_v20 = vld [vmem:[%s1490_s7 + $0x30] sm:$0xff]  ;;  %v264_v22 = vpack.c.bf16 %v258_v19, %v257_v18  ;;  %vm786_vm4 = vcmask 1043459   ;;  %vm788_vm5 = vcmask 1044484  }
  0x1b   : > { %v265_v17 = vpack.c.bf16 %v260_v15, %v259_v14  ;;  %v262_v21 = vld [vmem:[%s1490_s7 + $0x38] sm:$0xff]  ;;  %vm790_vm6 = vcmask 1045509   ;;  %vm792_vm7 = vcmask 1046534   ;;  %vm794_vm8 = vcmask 1047559  }
  0x1c   : > { %v266_v23 = vpack.c.bf16 %v262_v21, %v261_v20 }
  0x1d   : > { %311 = vmatpush.bf16.msra.mxu0 %v1218_v10  ;;  %1312 = vmatpush.bf16.msra.mxu2 %v1218_v10 }
  0x1e   : > { %340 = vmatpush.bf16.msra.mxu1 %v1222_v13  ;;  %1314 = vmatpush.bf16.msra.mxu3 %v1222_v13 }
  0x20   : > { %1231 = vmatmul.msk.bf16.vlgmr.msra.gmra.mxu0 %vm291_vm0, %v263_v16  ;;  %1233 = vmatmul.msk.bf16.vlgmr.msra.gmra.mxu2 %vm291_vm0, %v265_v17 }
  0x21   : > { %1235 = vmatmul.msk.bf16.vlgmr.msra.gmra.mxu1 %vm291_vm0, %v263_v16  ;;  %1237 = vmatmul.msk.bf16.vlgmr.msra.gmra.mxu3 %vm291_vm0, %v265_v17 }
  0x30   : > { %1232 = vmatmul.msk.bf16.gmra.mxu0 %vm291_vm0, %v264_v22  ;;  %1234 = vmatmul.msk.bf16.gmra.mxu2 %vm291_vm0, %v266_v23 }
  0x31   : > { %1236 = vmatmul.msk.bf16.gmra.mxu1 %vm291_vm0, %v264_v22  ;;  %1238 = vmatmul.msk.bf16.gmra.mxu3 %vm291_vm0, %v266_v23 }
  0x9d   : > { %v313_v24 = vpop.f32.mrf.mxu0 }
  0x9e   : > { %v342_v25 = vpop.f32.mrf.mxu1 }
  0x9f   : > { %v378_v26 = vrot.slane %v342_v25, 4 }
  0xa1   : > { %v387_v27 = vsel %vm386_vm1, %v313_v24, %v378_v26  ;;  %v388_v28 = vsel %vm386_vm1, %v378_v26, %v313_v24 }
  0xa2   : > { %v389_v29 = vrot.slane %v388_v28, 4  ;;  %411 = vst [vmem:[#allocation1] ss:$2 sm:$0xff] %v387_v27 }
  0xa3   : > { %v323_v34 = vpop.f32.mrf.mxu2 }
  0xa4   : > { %415 = vst [vmem:[#allocation1 + $0x10] ss:$2 sm:$0xff] %v389_v29  ;;  %v352_v30 = vpop.f32.mrf.mxu3 }
  0xa5   : > { %v315_v31 = vpop.f32.mrf.mxu0  ;;  %v382_v54 = vrot.slane %v352_v30, 4 }
  0xa6   : > { %v344_v32 = vpop.f32.mrf.mxu1 }
  0xa7   : > { %v379_v33 = vrot.slane %v344_v32, 4  ;;  %v399_v7 = vsel %vm386_vm1, %v323_v34, %v382_v54  ;;  %v400_v8 = vsel %vm386_vm1, %v382_v54, %v323_v34 }
  0xa8   : > { %v401_v27 = vrot.slane %v400_v8, 4 }
  0xa9   : > { %v390_v35 = vsel %vm386_vm1, %v315_v31, %v379_v33  ;;  %v391_v36 = vsel %vm386_vm1, %v379_v33, %v315_v31  ;;  %v412_v37 = vld.sshfl [vmem:[#allocation1] sm:$0xff pattern:$0x75316420]  ;;  %v413_v38 = vld.sshfl [vmem:[#allocation1 + $0x8] sm:$0xff pattern:$0x75316420] }
  0xaa   : > { %v392_v39 = vrot.slane %v391_v36, 4  ;;  %419 = vst [vmem:[#allocation1 + $0x20] ss:$2 sm:$0xff] %v390_v35  ;;  %v494_v40 = vsel %vm386_vm1, %v412_v37, -inf  ;;  %v501_v41 = vsel %vm386_vm1, %v413_v38, -inf }
  0xab   : > { %v416_v42 = vld.sshfl [vmem:[#allocation1 + $0x10] sm:$0xff pattern:$0x75316420]  ;;  %v417_v43 = vld.sshfl [vmem:[#allocation1 + $0x18] sm:$0xff pattern:$0x75316420]  ;;  %v325_v6 = vpop.f32.mrf.mxu2 }
  0xac   : > { %423 = vst [vmem:[#allocation1 + $0x30] ss:$2 sm:$0xff] %v392_v39  ;;  %v495_v44 = vrot.slane %v494_v40, 4  ;;  %v502_v45 = vrot.slane %v501_v41, 4  ;;  %v508_v46 = vsel %vm386_vm1, %v416_v42, -inf  ;;  %v515_v47 = vsel %vm386_vm1, %v417_v43, -inf  ;;  %v354_v50 = vpop.f32.mrf.mxu3 }
  0xad   : > { %v509_v48 = vrot.slane %v508_v46, 4  ;;  %v516_v49 = vrot.slane %v515_v47, 4  ;;  %v318_v55 = vpop.f32.mrf.mxu0  ;;  %v383_v61 = vrot.slane %v354_v50, 4 }
  0xae   : > { %v347_v51 = vpop.f32.mrf.mxu1  ;;  %v496_v52 = vmax.f32 %v494_v40, %v495_v44  ;;  %v503_v53 = vmax.f32 %v501_v41, %v502_v45 }
  0xaf   : > { %v380_v56 = vrot.slane %v347_v51, 4  ;;  %v510_v57 = vmax.f32 %v508_v46, %v509_v48  ;;  %v517_v58 = vmax.f32 %v515_v47, %v516_v49  ;;  %v1553_v19 = vsel %vm386_vm1, %v383_v61, %v325_v6 }
  0xb0   : > { %v497_v59 = vrot.slane %v496_v52, 2  ;;  %v504_v60 = vrot.slane %v503_v53, 2  ;;  %v404_v32 = vrot.slane %v1553_v19, 4  ;;  %v1561_v38 = vsel %vm386_vm1, %v325_v6, %v383_v61 }
  0xb1   : > { %v393_v62 = vsel %vm386_vm1, %v318_v55, %v380_v56  ;;  %v394_v63 = vsel %vm386_vm1, %v380_v56, %v318_v55  ;;  %v511_v0 = vrot.slane %v510_v57, 2  ;;  %v518_v1 = vrot.slane %v517_v58, 2  ;;  %v420_v2 = vld.sshfl [vmem:[#allocation1 + $0x20] sm:$0xff pattern:$0x75316420] }
  0xb2   : > { %v395_v3 = vrot.slane %v394_v63, 4  ;;  %426 = vst [vmem:[#allocation1] ss:$2 sm:$0xff] %v393_v62  ;;  %v498_v4 = vmax.f32 %v496_v52, %v497_v59  ;;  %v505_v5 = vmax.f32 %v503_v53, %v504_v60  ;;  %v421_v11 = vld.sshfl [vmem:[#allocation1 + $0x28] sm:$0xff pattern:$0x75316420] }
  0xb3   : > { %v512_v9 = vmax.f32 %v510_v57, %v511_v0  ;;  %v519_v10 = vmax.f32 %v517_v58, %v518_v1  ;;  %v424_v12 = vld.sshfl [vmem:[#allocation1 + $0x30] sm:$0xff pattern:$0x75316420]  ;;  %v522_v15 = vsel %vm386_vm1, %v420_v2, -inf  ;;  %v529_v16 = vsel %vm386_vm1, %v421_v11, -inf }
  0xb4   : > { %429 = vst [vmem:[#allocation1 + $0x10] ss:$2 sm:$0xff] %v395_v3  ;;  %v499_v13 = vrot.slane %v498_v4, 1  ;;  %v506_v14 = vrot.slane %v505_v5, 1  ;;  %v523_v21 = vrot.slane %v522_v15, 4  ;;  %v530_v25 = vrot.slane %v529_v16, 4 }
  0xb5   : > { %v513_v17 = vrot.slane %v512_v9, 1  ;;  %v520_v18 = vrot.slane %v519_v10, 1  ;;  %v425_v20 = vld.sshfl [vmem:[#allocation1 + $0x38] sm:$0xff pattern:$0x75316420]  ;;  %v536_v26 = vsel %vm386_vm1, %v424_v12, -inf  ;;  %v320_v39 = vpop.f32.mrf.mxu0 }
  0xb6   : > { %v500_v22 = vmax.f32 %v498_v4, %v499_v13  ;;  %v507_v23 = vmax.f32 %v505_v5, %v506_v14  ;;  %v349_v24 = vpop.f32.mrf.mxu1  ;;  %v537_v33 = vrot.slane %v536_v26, 4  ;;  %v543_v34 = vsel %vm386_vm1, %v425_v20, -inf }
  0xb7   : > { %v514_v28 = vmax.f32 %v512_v9, %v513_v17  ;;  %v521_v29 = vmax.f32 %v519_v10, %v520_v18  ;;  %v381_v30 = vrot.slane %v349_v24, 4  ;;  %v524_v40 = vmax.f32 %v522_v15, %v523_v21 }
  0xb8   : > { %v1556_v31 = vpack.c.bf16 %v507_v23, %v500_v22  ;;  %v531_v41 = vmax.f32 %v529_v16, %v530_v25  ;;  %v538_v51 = vmax.f32 %v536_v26, %v537_v33 }
  0xb9   : > { %v427_v35 = vld.sshfl [vmem:[#allocation1] sm:$0xff pattern:$0x75316420]  ;;  %v428_v36 = vld.sshfl [vmem:[#allocation1 + $0x8] sm:$0xff pattern:$0x75316420]  ;;  %v719_v37 = vpack.c.bf16 %v521_v29, %v514_v28  ;;  %v396_v44 = vsel %vm386_vm1, %v320_v39, %v381_v30  ;;  %v397_v45 = vsel %vm386_vm1, %v381_v30, %v320_v39 }
  0xba   : > { %438 = vst [vmem:[#allocation1] ss:$2 sm:$0xff] %v399_v7  ;;  %v550_v42 = vsel %vm386_vm1, %v427_v35, -inf  ;;  %v557_v43 = vsel %vm386_vm1, %v428_v36, -inf  ;;  %v750_v48 = vunpack.c.l.b16 %v1556_v31  ;;  %v751_v49 = vunpack.c.h.b16 %v1556_v31 }
  0xbb   : > { %v430_v46 = vld.sshfl [vmem:[#allocation1 + $0x10] sm:$0xff pattern:$0x75316420]  ;;  %v431_v47 = vld.sshfl [vmem:[#allocation1 + $0x18] sm:$0xff pattern:$0x75316420]  ;;  %v752_v50 = vunpack.c.l.b16 %v719_v37  ;;  %v753_v58 = vunpack.c.h.b16 %v719_v37 }
  0xbc   : > { %441 = vst [vmem:[#allocation1 + $0x10] ss:$2 sm:$0xff] %v401_v27  ;;  %v551_v52 = vrot.slane %v550_v42, 4  ;;  %v558_v53 = vrot.slane %v557_v43, 4  ;;  %v564_v54 = vsel %vm386_vm1, %v430_v46, -inf  ;;  %v571_v55 = vsel %vm386_vm1, %v431_v47, -inf }
  0xbd   : > { %v565_v56 = vrot.slane %v564_v54, 4  ;;  %v572_v57 = vrot.slane %v571_v55, 4  ;;  %v1572_v59 = vsel %vm782_vm2, %v752_v50, %v750_v48  ;;  %432 = vst [vmem:[#allocation1 + $0x20] ss:$2 sm:$0xff] %v396_v44  ;;  %v398_v62 = vrot.slane %v397_v45, 4 }
  0xbe   : > { %v552_v60 = vmax.f32 %v550_v42, %v551_v52  ;;  %v559_v61 = vmax.f32 %v557_v43, %v558_v53  ;;  %v525_v63 = vrot.slane %v524_v40, 2  ;;  %v532_v2 = vrot.slane %v531_v41, 2 }
  0xbf   : > { %v566_v0 = vmax.f32 %v564_v54, %v565_v56  ;;  %v573_v1 = vmax.f32 %v571_v55, %v572_v57  ;;  %v539_v3 = vrot.slane %v538_v51, 2  ;;  %435 = vst [vmem:[#allocation1 + $0x30] ss:$2 sm:$0xff] %v398_v62  ;;  %v544_v7 = vrot.slane %v543_v34, 4 }
  0xc0   : > { %v553_v4 = vrot.slane %v552_v60, 2  ;;  %v560_v5 = vrot.slane %v559_v61, 2  ;;  %v526_v6 = vmax.f32 %v524_v40, %v525_v63  ;;  %v533_v10 = vmax.f32 %v531_v41, %v532_v2 }
  0xc1   : > { %v567_v8 = vrot.slane %v566_v0, 2  ;;  %v574_v9 = vrot.slane %v573_v1, 2  ;;  %v540_v11 = vmax.f32 %v538_v51, %v539_v3  ;;  %v545_v15 = vmax.f32 %v543_v34, %v544_v7 }
  0xc2   : > { %v554_v12 = vmax.f32 %v552_v60, %v553_v4  ;;  %v561_v13 = vmax.f32 %v559_v61, %v560_v5  ;;  %v527_v14 = vrot.slane %v526_v6, 1  ;;  %v534_v18 = vrot.slane %v533_v10, 1  ;;  %v357_v5 = vpop.f32.mrf.mxu3 }
  0xc3   : > { %v568_v16 = vmax.f32 %v566_v0, %v567_v8  ;;  %v575_v17 = vmax.f32 %v573_v1, %v574_v9  ;;  %v541_v20 = vrot.slane %v540_v11, 1  ;;  %v546_v25 = vrot.slane %v545_v15, 2 }
  0xc4   : > { %v555_v21 = vrot.slane %v554_v12, 1  ;;  %v562_v22 = vrot.slane %v561_v13, 1  ;;  %v433_v23 = vld.sshfl [vmem:[#allocation1 + $0x20] sm:$0xff pattern:$0x75316420]  ;;  %v528_v24 = vmax.f32 %v526_v6, %v527_v14  ;;  %v1575_v28 = vsel %vm782_vm2, %v753_v58, %v751_v49 }
  0xc5   : > { %v569_v26 = vrot.slane %v568_v16, 1  ;;  %v576_v27 = vrot.slane %v575_v17, 1  ;;  %v434_v29 = vld.sshfl [vmem:[#allocation1 + $0x28] sm:$0xff pattern:$0x75316420]  ;;  %v535_v30 = vmax.f32 %v533_v10, %v534_v18  ;;  %v547_v34 = vmax.f32 %v545_v15, %v546_v25 }
  0xc6   : > { %v556_v31 = vmax.f32 %v554_v12, %v555_v21  ;;  %v563_v33 = vmax.f32 %v561_v13, %v562_v22  ;;  %444 = vst [vmem:[#allocation1 + $0x20] ss:$2 sm:$0xff] %v1561_v38  ;;  %v578_v35 = vsel %vm386_vm1, %v433_v23, -inf  ;;  %v436_v39 = vld.sshfl [vmem:[#allocation1 + $0x30] sm:$0xff pattern:$0x75316420]  ;;  %v542_v41 = vmax.f32 %v540_v11, %v541_v20 }
  0xc7   : > { %v570_v36 = vmax.f32 %v568_v16, %v569_v26  ;;  %v577_v37 = vmax.f32 %v575_v17, %v576_v27  ;;  %v437_v40 = vld.sshfl [vmem:[#allocation1 + $0x38] sm:$0xff pattern:$0x75316420]  ;;  %v720_v42 = vpack.c.bf16 %v535_v30, %v528_v24  ;;  %v548_v44 = vrot.slane %v547_v34, 1  ;;  %v328_v24 = vpop.f32.mrf.mxu2 }
  0xc8   : > { %v722_v43 = vpack.c.bf16 %v563_v33, %v556_v31  ;;  %447 = vst [vmem:[#allocation1 + $0x30] ss:$2 sm:$0xff] %v404_v32  ;;  %v579_v45 = vrot.slane %v578_v35, 4  ;;  %v585_v46 = vsel %vm386_vm1, %v434_v29, -inf  ;;  %v592_v38 = vsel %vm386_vm1, %v436_v39, -inf }
  0xc9   : > { %v723_v47 = vpack.c.bf16 %v577_v37, %v570_v36  ;;  %v586_v48 = vrot.slane %v585_v46, 4  ;;  %v599_v49 = vsel %vm386_vm1, %v437_v40, -inf  ;;  %v549_v52 = vmax.f32 %v547_v34, %v548_v44  ;;  %v439_v11 = vld.sshfl [vmem:[#allocation1] sm:$0xff pattern:$0x75316420] }
  0xca   : > { %v758_v50 = vunpack.c.l.b16 %v722_v43  ;;  %v759_v51 = vunpack.c.h.b16 %v722_v43  ;;  %v580_v53 = vmax.f32 %v578_v35, %v579_v45  ;;  %v593_v55 = vrot.slane %v592_v38, 4  ;;  %v440_v16 = vld.sshfl [vmem:[#allocation1 + $0x8] sm:$0xff pattern:$0x75316420] }
  0xcb   : > { %v587_v54 = vmax.f32 %v585_v46, %v586_v48  ;;  %v600_v56 = vrot.slane %v599_v49, 4  ;;  %v754_v57 = vunpack.c.l.b16 %v720_v42  ;;  %v721_v32 = vpack.c.bf16 %v549_v52, %v542_v41  ;;  %v442_v35 = vld.sshfl [vmem:[#allocation1 + $0x10] sm:$0xff pattern:$0x75316420] }
  0xcc   : > { %v581_v19 = vrot.slane %v580_v53, 2  ;;  %v755_v58 = vunpack.c.h.b16 %v720_v42  ;;  %v760_v60 = vunpack.c.l.b16 %v723_v47  ;;  %v594_v62 = vmax.f32 %v592_v38, %v593_v55  ;;  %v359_v38 = vpop.f32.mrf.mxu3 }
  0xcd   : > { %v588_v61 = vrot.slane %v587_v54, 2  ;;  %v601_v63 = vmax.f32 %v599_v49, %v600_v56  ;;  %v761_v0 = vunpack.c.h.b16 %v723_v47  ;;  %v756_v2 = vunpack.c.l.b16 %v721_v32  ;;  %v445_v49 = vld.sshfl [vmem:[#allocation1 + $0x20] sm:$0xff pattern:$0x75316420] }
  0xce   : > { %v582_v1 = vmax.f32 %v580_v53, %v581_v19  ;;  %v757_v3 = vunpack.c.h.b16 %v721_v32  ;;  %v785_v4 = vsel %vm784_vm3, %v754_v57, %v1572_v59  ;;  %v595_v7 = vrot.slane %v594_v62, 2 }
  0xcf   : > { %v589_v6 = vmax.f32 %v587_v54, %v588_v61  ;;  %v602_v8 = vrot.slane %v601_v63, 2  ;;  %v787_v10 = vsel %vm786_vm4, %v756_v2, %v785_v4  ;;  %v797_v18 = vsel %vm784_vm3, %v755_v58, %v1575_v28  ;;  %v443_v28 = vld.sshfl [vmem:[#allocation1 + $0x18] sm:$0xff pattern:$0x75316420]  ;;  %v330_v2 = vpop.f32.mrf.mxu2 }
  0xd0   : > { %v583_v9 = vrot.slane %v582_v1, 1  ;;  %v596_v13 = vmax.f32 %v594_v62, %v595_v7  ;;  %v789_v15 = vsel %vm788_vm5, %v758_v50, %v787_v10  ;;  %v798_v23 = vsel %vm786_vm4, %v757_v3, %v797_v18  ;;  %v446_v3 = vld.sshfl [vmem:[#allocation1 + $0x28] sm:$0xff pattern:$0x75316420] }
  0xd1   : > { %v590_v12 = vrot.slane %v589_v6, 1  ;;  %v603_v14 = vmax.f32 %v601_v63, %v602_v8  ;;  %v791_v59 = vsel %vm790_vm6, %v760_v60, %v789_v15  ;;  %v799_v25 = vsel %vm788_vm5, %v759_v51, %v798_v23 }
  0xd2   : > { %v584_v17 = vmax.f32 %v582_v1, %v583_v9  ;;  %v597_v21 = vrot.slane %v596_v13, 1  ;;  %v384_v26 = vrot.slane %v357_v5, 4  ;;  %v606_v27 = vsel %vm386_vm1, %v439_v11, -inf }
  0xd3   : > { %v591_v20 = vmax.f32 %v589_v6, %v590_v12  ;;  %v604_v22 = vrot.slane %v603_v14, 1  ;;  %v613_v29 = vsel %vm386_vm1, %v440_v16, -inf  ;;  %v800_v34 = vsel %vm790_vm6, %v761_v0, %v799_v25 }
  0xd4   : > { %v598_v30 = vmax.f32 %v596_v13, %v597_v21  ;;  %v405_v36 = vsel %vm386_vm1, %v328_v24, %v384_v26  ;;  %v406_v37 = vsel %vm386_vm1, %v384_v26, %v328_v24  ;;  %v607_v39 = vrot.slane %v606_v27, 4 }
  0xd5   : > { %v605_v31 = vmax.f32 %v603_v14, %v604_v22  ;;  %v724_v33 = vpack.c.bf16 %v591_v20, %v584_v17  ;;  %v614_v40 = vrot.slane %v613_v29, 4  ;;  %v407_v44 = vrot.slane %v406_v37, 4  ;;  %450 = vst [vmem:[#allocation1] ss:$2 sm:$0xff] %v405_v36 }
  0xd6   : > { %v608_v45 = vmax.f32 %v606_v27, %v607_v39  ;;  %v620_v47 = vsel %vm386_vm1, %v442_v35, -inf  ;;  %v627_v48 = vsel %vm386_vm1, %v443_v28, -inf  ;;  %v385_v58 = vrot.slane %v359_v38, 4  ;;  %v449_v28 = vld.sshfl [vmem:[#allocation1 + $0x38] sm:$0xff pattern:$0x75316420] }
  0xd7   : > { %v725_v41 = vpack.c.bf16 %v605_v31, %v598_v30  ;;  %v762_v42 = vunpack.c.l.b16 %v724_v33  ;;  %v763_v43 = vunpack.c.h.b16 %v724_v33  ;;  %v615_v46 = vmax.f32 %v613_v29, %v614_v40  ;;  %453 = vst [vmem:[#allocation1 + $0x10] ss:$2 sm:$0xff] %v407_v44  ;;  %v448_v30 = vld.sshfl [vmem:[#allocation1 + $0x30] sm:$0xff pattern:$0x75316420] }
  0xd8   : > { %v609_v54 = vrot.slane %v608_v45, 2  ;;  %v621_v56 = vrot.slane %v620_v47, 4  ;;  %v628_v57 = vrot.slane %v627_v48, 4  ;;  %v634_v60 = vsel %vm386_vm1, %v445_v49, -inf }
  0xd9   : > { %v764_v50 = vunpack.c.l.b16 %v725_v41  ;;  %v765_v51 = vunpack.c.h.b16 %v725_v41  ;;  %v793_v52 = vsel %vm792_vm7, %v762_v42, %v791_v59  ;;  %v801_v53 = vsel %vm792_vm7, %v763_v43, %v800_v34 }
  0xda   : > { %v616_v55 = vrot.slane %v615_v46, 2  ;;  %v610_v62 = vmax.f32 %v608_v45, %v609_v54  ;;  %v622_v0 = vmax.f32 %v620_v47, %v621_v56  ;;  %v629_v1 = vmax.f32 %v627_v48, %v628_v57 }
  0xdb   : > { %v795_v19 = vsel %vm794_vm8, %v764_v50, %v793_v52  ;;  %v802_v32 = vsel %vm794_vm8, %v765_v51, %v801_v53  ;;  %v635_v4 = vrot.slane %v634_v60, 4  ;;  %v408_v16 = vsel %vm386_vm1, %v330_v2, %v385_v58 }
  0xdc   : > { %v817_v61 = vpack.c.b16 %v802_v32, %v795_v19  ;;  %v617_v63 = vmax.f32 %v615_v46, %v616_v55  ;;  %v451_v5 = vld.sshfl [vmem:[#allocation1] sm:$0xff pattern:$0x75316420]  ;;  %v611_v6 = vrot.slane %v610_v62, 1  ;;  %v623_v9 = vrot.slane %v622_v0, 2 }
  0xdd   : > { %v452_v8 = vld.sshfl [vmem:[#allocation1 + $0x8] sm:$0xff pattern:$0x75316420]  ;;  %v630_v10 = vrot.slane %v629_v1, 2  ;;  %v662_v11 = vsel %vm386_vm1, %v451_v5, -inf  ;;  %v409_v17 = vsel %vm386_vm1, %v385_v58, %v330_v2  ;;  %v636_v25 = vmax.f32 %v634_v60, %v635_v4 }
  0xde   : > { %821 = vst [vmem:[#allocation2] sm:$0xff] %v817_v61  ;;  %v618_v7 = vrot.slane %v617_v63, 1  ;;  %v454_v12 = vld.sshfl [vmem:[#allocation1 + $0x10] sm:$0xff pattern:$0x75316420]  ;;  %v612_v14 = vmax.f32 %v610_v62, %v611_v6  ;;  %v624_v59 = vmax.f32 %v622_v0, %v623_v9  ;;  %v663_v20 = vrot.slane %v662_v11, 4 }
  0xdf   : > { %v455_v13 = vld.sshfl [vmem:[#allocation1 + $0x18] sm:$0xff pattern:$0x75316420]  ;;  %v631_v18 = vmax.f32 %v629_v1, %v630_v10  ;;  %v669_v21 = vsel %vm386_vm1, %v452_v8, -inf  ;;  %456 = vst [vmem:[#allocation1 + $0x20] ss:$2 sm:$0xff] %v408_v16 }
  0xe0   : > { %v619_v15 = vmax.f32 %v617_v63, %v618_v7  ;;  %v670_v22 = vrot.slane %v669_v21, 4  ;;  %v676_v23 = vsel %vm386_vm1, %v454_v12, -inf  ;;  %v683_v24 = vsel %vm386_vm1, %v455_v13, -inf }
  0xe1   : > { %v625_v26 = vrot.slane %v624_v59, 1  ;;  %v632_v27 = vrot.slane %v631_v18, 1  ;;  %v664_v29 = vmax.f32 %v662_v11, %v663_v20  ;;  %v677_v33 = vrot.slane %v676_v23, 4 }
  0xe2   : > { %v671_v31 = vmax.f32 %v669_v21, %v670_v22  ;;  %v684_v34 = vrot.slane %v683_v24, 4  ;;  %v1611_v35 = vpack.c.bf16 %v619_v15, %v612_v14  ;;  %v410_v40 = vrot.slane %v409_v17, 4 }
  0xe3   : > { %v626_v36 = vmax.f32 %v624_v59, %v625_v26  ;;  %v633_v37 = vmax.f32 %v631_v18, %v632_v27  ;;  %v665_v39 = vrot.slane %v664_v29, 2  ;;  %v637_v42 = vrot.slane %v636_v25, 2 }
  0xe4   : > { %v672_v41 = vrot.slane %v671_v31, 2  ;;  %v641_v43 = vsel %vm386_vm1, %v446_v3, -inf  ;;  %v648_v44 = vsel %vm386_vm1, %v448_v30, -inf  ;;  %459 = vst [vmem:[#allocation1 + $0x30] ss:$2 sm:$0xff] %v410_v40  ;;  %v678_v51 = vmax.f32 %v676_v23, %v677_v33 }
  0xe5   : > { %v666_v45 = vmax.f32 %v664_v29, %v665_v39  ;;  %v1615_v46 = vpack.c.bf16 %v633_v37, %v626_v36  ;;  %v642_v47 = vrot.slane %v641_v43, 4  ;;  %v649_v48 = vrot.slane %v648_v44, 4 }
  0xe6   : > { %v673_v38 = vmax.f32 %v671_v31, %v672_v41  ;;  %v638_v49 = vmax.f32 %v636_v25, %v637_v42  ;;  %v685_v52 = vmax.f32 %v683_v24, %v684_v34  ;;  %v457_v54 = vld.sshfl [vmem:[#allocation1 + $0x20] sm:$0xff pattern:$0x75316420]  ;;  %v655_v57 = vsel %vm386_vm1, %v449_v28, -inf }
  0xe7   : > { %v643_v50 = vmax.f32 %v641_v43, %v642_v47  ;;  %v667_v53 = vrot.slane %v666_v45, 1  ;;  %v650_v56 = vmax.f32 %v648_v44, %v649_v48  ;;  %v766_v19 = vunpack.c.l.b16 %v1611_v35  ;;  %v458_v1 = vld.sshfl [vmem:[#allocation1 + $0x28] sm:$0xff pattern:$0x75316420] }
  0xe8   : > { %v639_v55 = vrot.slane %v638_v49, 1  ;;  %v767_v32 = vunpack.c.h.b16 %v1611_v35  ;;  %v768_v58 = vunpack.c.l.b16 %v1615_v46  ;;  %v674_v61 = vrot.slane %v673_v38, 1 }
  0xe9   : > { %v644_v60 = vrot.slane %v643_v50, 2  ;;  %v769_v62 = vunpack.c.h.b16 %v1615_v46  ;;  %v651_v63 = vrot.slane %v650_v56, 2  ;;  %v656_v0 = vrot.slane %v655_v57, 4 }
  0xea   : > { %v679_v3 = vrot.slane %v678_v51, 2  ;;  %v686_v4 = vrot.slane %v685_v52, 2  ;;  %v690_v5 = vsel %vm386_vm1, %v457_v54, -inf  ;;  %v668_v6 = vmax.f32 %v666_v45, %v667_v53 }
  0xeb   : > { %v645_v2 = vmax.f32 %v643_v50, %v644_v60  ;;  %v460_v7 = vld.sshfl [vmem:[#allocation1 + $0x30] sm:$0xff pattern:$0x75316420]  ;;  %v640_v8 = vmax.f32 %v638_v49, %v639_v55  ;;  %v652_v9 = vmax.f32 %v650_v56, %v651_v63  ;;  %v657_v10 = vmax.f32 %v655_v57, %v656_v0  ;;  %v461_v11 = vld.sshfl [vmem:[#allocation1 + $0x38] sm:$0xff pattern:$0x75316420] }
  0xec   : > { %v680_v13 = vmax.f32 %v678_v51, %v679_v3  ;;  %v687_v14 = vmax.f32 %v685_v52, %v686_v4  ;;  %v691_v15 = vrot.slane %v690_v5, 4  ;;  %v697_v59 = vsel %vm386_vm1, %v458_v1, -inf }
  0xed   : > { %v646_v12 = vrot.slane %v645_v2, 1  ;;  %v653_v16 = vrot.slane %v652_v9, 1  ;;  %v658_v17 = vrot.slane %v657_v10, 2  ;;  %v704_v18 = vsel %vm386_vm1, %v460_v7, -inf }
  0xee   : > { %v681_v21 = vrot.slane %v680_v13, 1  ;;  %v688_v22 = vrot.slane %v687_v14, 1  ;;  %v692_v23 = vmax.f32 %v690_v5, %v691_v15  ;;  %v803_v24 = vsel %vm782_vm2, %v768_v58, %v766_v19 }
  0xef   : > { %v647_v20 = vmax.f32 %v645_v2, %v646_v12  ;;  %v659_v25 = vmax.f32 %v657_v10, %v658_v17  ;;  %v698_v26 = vrot.slane %v697_v59, 4  ;;  %v705_v27 = vrot.slane %v704_v18, 4 }
  0xf0   : > { %v675_v29 = vmax.f32 %v673_v38, %v674_v61  ;;  %v654_v30 = vmax.f32 %v652_v9, %v653_v16  ;;  %v693_v31 = vrot.slane %v692_v23, 2  ;;  %v711_v33 = vsel %vm386_vm1, %v461_v11, -inf }
  0xf1   : > { %v660_v34 = vrot.slane %v659_v25, 1  ;;  %v699_v35 = vmax.f32 %v697_v59, %v698_v26  ;;  %v706_v28 = vmax.f32 %v704_v18, %v705_v27  ;;  %v712_v36 = vrot.slane %v711_v33, 4 }
  0xf2   : > { %v682_v37 = vmax.f32 %v680_v13, %v681_v21  ;;  %v689_v39 = vmax.f32 %v687_v14, %v688_v22  ;;  %v694_v40 = vmax.f32 %v692_v23, %v693_v31  ;;  %v728_v41 = vpack.c.bf16 %v647_v20, %v640_v8 }
  0xf3   : > { %v661_v42 = vmax.f32 %v659_v25, %v660_v34  ;;  %v700_v43 = vrot.slane %v699_v35, 2  ;;  %v707_v44 = vrot.slane %v706_v28, 2  ;;  %v713_v45 = vmax.f32 %v711_v33, %v712_v36 }
  0xf4   : > { %v730_v46 = vpack.c.bf16 %v675_v29, %v668_v6  ;;  %v695_v47 = vrot.slane %v694_v40, 1  ;;  %v770_v48 = vunpack.c.l.b16 %v728_v41  ;;  %v771_v38 = vunpack.c.h.b16 %v728_v41 }
  0xf5   : > { %v701_v49 = vmax.f32 %v699_v35, %v700_v43  ;;  %v708_v50 = vmax.f32 %v706_v28, %v707_v44  ;;  %v714_v51 = vrot.slane %v713_v45, 2  ;;  %v729_v52 = vpack.c.bf16 %v661_v42, %v654_v30 }
  0xf6   : > { %v810_v53 = vsel %vm782_vm2, %v769_v62, %v767_v32  ;;  %v696_v54 = vmax.f32 %v694_v40, %v695_v47  ;;  %v731_v55 = vpack.c.bf16 %v689_v39, %v682_v37  ;;  %v804_v56 = vsel %vm784_vm3, %v770_v48, %v803_v24 }
  0xf7   : > { %v702_v57 = vrot.slane %v701_v49, 1  ;;  %v709_v19 = vrot.slane %v708_v50, 1  ;;  %v715_v58 = vmax.f32 %v713_v45, %v714_v51  ;;  %v772_v60 = vunpack.c.l.b16 %v729_v52 }
  0xf8   : > { %v773_v61 = vunpack.c.h.b16 %v729_v52  ;;  %v774_v63 = vunpack.c.l.b16 %v730_v46  ;;  %v775_v0 = vunpack.c.h.b16 %v730_v46  ;;  %v811_v1 = vsel %vm784_vm3, %v771_v38, %v810_v53 }
  0xf9   : > { %v703_v2 = vmax.f32 %v701_v49, %v702_v57  ;;  %v710_v3 = vmax.f32 %v708_v50, %v709_v19  ;;  %v716_v4 = vrot.slane %v715_v58, 1  ;;  %v805_v5 = vsel %vm786_vm4, %v772_v60, %v804_v56 }
  0xfa   : > { %v812_v32 = vsel %vm786_vm4, %v773_v61, %v811_v1  ;;  %v806_v7 = vsel %vm788_vm5, %v774_v63, %v805_v5  ;;  %v776_v9 = vunpack.c.l.b16 %v731_v55  ;;  %v777_v10 = vunpack.c.h.b16 %v731_v55 }
  0xfb   : > { %v717_v62 = vmax.f32 %v715_v58, %v716_v4  ;;  %v732_v6 = vpack.c.bf16 %v703_v2, %v696_v54  ;;  %v813_v8 = vsel %vm788_vm5, %v775_v0, %v812_v32 }
  0xfc   : > { %v807_v14 = vsel %vm790_vm6, %v776_v9, %v806_v7  ;;  %v814_v15 = vsel %vm790_vm6, %v777_v10, %v813_v8 }
  0xfd   : > { %v733_v11 = vpack.c.bf16 %v717_v62, %v710_v3  ;;  %v778_v12 = vunpack.c.l.b16 %v732_v6  ;;  %v779_v13 = vunpack.c.h.b16 %v732_v6 }
  0xff   : > { %v780_v16 = vunpack.c.l.b16 %v733_v11  ;;  %v781_v17 = vunpack.c.h.b16 %v733_v11  ;;  %v808_v59 = vsel %vm792_vm7, %v778_v12, %v807_v14  ;;  %v815_v18 = vsel %vm792_vm7, %v779_v13, %v814_v15 }
 0x101   : > { %v809_v20 = vsel %vm794_vm8, %v780_v16, %v808_v59  ;;  %v816_v21 = vsel %vm794_vm8, %v781_v17, %v815_v18 }
 0x102   : > { %v818_v22 = vpack.c.b16 %v816_v21, %v809_v20 }
 0x104   : > { %822 = vst [vmem:[#allocation2 + $0x8] sm:$0xff] %v818_v22 }
 0x105 PF: > { %v1300_v23 = vld [vmem:[%s1725_s1 + $0x8] sm:$0xff]  ;;  %s1239_s14 = sshll.u32 %s1401_s20, 5  ;;  %v1299_v24 = vld [vmem:[%s1725_s1] sm:$0xff]  ;;  %vm847_vm9 = vcmask 261120   ;;  %vm918_vm10 = vcmask 130048  }
 0x106   : > { %s824_s15 = scalar_lea.vmem %s1490_s7, %s1239_s14  ;;  %860 = vmatpush.bf16.msra.mxu0 %v1300_v23  ;;  %v1252_v33 = vld [vmem:[#allocation2] sm:$0xf]  ;;  %v1256_v57 = vld [vmem:[#allocation2 + $0x4] sm:$0xf] }
 0x107   : > { %v1648_v25 = vld [vmem:[%s824_s15] sm:$0xff]  ;;  %v1650_v26 = vld [vmem:[%s824_s15 + $0x8] sm:$0xff]  ;;  %v1655_v29 = vld [vmem:[%s824_s15 + $0x10] sm:$0xff] }
 0x108   : > { %v829_v27 = vpack.c.bf16 %v1650_v26, %v1648_v25  ;;  %v1657_v30 = vld [vmem:[%s824_s15 + $0x18] sm:$0xff] }
 0x109   : > { %v830_v31 = vpack.c.bf16 %v1657_v30, %v1655_v29 }
 0x10a   : > { %861 = vmatpush.bf16.msra.mxu0 %v1299_v24 }
 0x10b   : > { %v1301_v34 = vld [vmem:[#allocation2 + $0x4] sm:$0xf0]  ;;  %v1302_v19 = vld [vmem:[#allocation2 + $0x8] sm:$0xf0] }
 0x10c   : > { %v1253_v35 = vor.u32 %v1301_v34, %v1252_v33  ;;  %v1257_v58 = vor.u32 %v1302_v19, %v1256_v57 }
 0x10d   : > { %1248 = vmatmul.msk.bf16.vlgmr.msra.gmra.mxu0 %vm847_vm9, %v829_v27 }
 0x10e   : > { %906 = vmatpush.bf16.xpose.msra.mxu1 %v1253_v35  ;;  %1000 = vmatpush.bf16.msra.mxu2 %v1257_v58 }
 0x11d   : > { %1249 = vmatmul.msk.bf16.gmra.mxu0 %vm847_vm9, %v830_v31 }
 0x18a   : > { %v863_v28 = vpop.f32.mrf.mxu0 }
 0x18b   : > { %v877_v36 = vpack.c.bf16 %v863_v28, %v863_v28 }
 0x18d   : > { %v885_v40 = vunpack.c.l.b16 %v877_v36 }
 0x192   : > { %v865_v37 = vpop.f32.mrf.mxu0 }
 0x193   : > { %v878_v39 = vpack.c.bf16 %v865_v37, %v865_v37 }
 0x195   : > { %v886_v41 = vunpack.c.l.b16 %v878_v39 }
 0x197   : > { %v889_v42 = vpack.c.b16 %v886_v41, %v885_v40 }
 0x199   : > { %907 = vmatmul.bf16.vlgmr.msra.gmra.mxu1 %v889_v42 }
 0x19a   : > { %v868_v43 = vpop.f32.mrf.mxu0 }
 0x19b   : > { %v879_v44 = vpack.c.bf16 %v868_v43, %v868_v43  ;;  %v1310_v43 = vld [vmem:[%s1727_s3 + $0x38] sm:$0xff] }
 0x19c   : > { %1091 = vmatpush.bf16.msrb.mxu2 %v1310_v43  ;;  %1315 = vmatpush.bf16.msra.mxu3 %v1310_v43 }
 0x19d   : > { %v887_v47 = vunpack.c.l.b16 %v879_v44  ;;  %v1309_v44 = vld [vmem:[%s1727_s3 + $0x30] sm:$0xff] }
 0x1a0   : > { %1092 = vmatpush.bf16.msrb.mxu2 %v1309_v44  ;;  %1316 = vmatpush.bf16.msra.mxu3 %v1309_v44 }
 0x1a2   : > { %v870_v45 = vpop.f32.mrf.mxu0 }
 0x1a3   : > { %v880_v46 = vpack.c.bf16 %v870_v45, %v870_v45  ;;  %v1308_v45 = vld [vmem:[%s1727_s3 + $0x28] sm:$0xff] }
 0x1a4   : > { %1093 = vmatpush.bf16.msrb.mxu2 %v1308_v45  ;;  %1317 = vmatpush.bf16.msra.mxu3 %v1308_v45 }
 0x1a5   : > { %v888_v48 = vunpack.c.l.b16 %v880_v46  ;;  %v1307_v46 = vld [vmem:[%s1727_s3 + $0x20] sm:$0xff] }
 0x1a7   : > { %v890_v38 = vpack.c.b16 %v888_v48, %v887_v47  ;;  %v1306_v47 = vld [vmem:[%s1727_s3 + $0x18] sm:$0xff]  ;;  %v1305_v48 = vld [vmem:[%s1727_s3 + $0x10] sm:$0xff] }
 0x1a8   : > { %1094 = vmatpush.bf16.msrb.mxu2 %v1307_v46  ;;  %1318 = vmatpush.bf16.msra.mxu3 %v1307_v46 }
 0x1a9   : > { %912 = vmatmul.bf16.gmra.mxu1 %v890_v38  ;;  %v1304_v38 = vld [vmem:[%s1727_s3 + $0x8] sm:$0xff] }
 0x1ac   : > { %1095 = vmatpush.bf16.msrb.mxu2 %v1306_v47  ;;  %1319 = vmatpush.bf16.msra.mxu3 %v1306_v47 }
 0x1b0   : > { %1096 = vmatpush.bf16.msrb.mxu2 %v1305_v48  ;;  %1320 = vmatpush.bf16.msra.mxu3 %v1305_v48 }
 0x1b4   : > { %1097 = vmatpush.bf16.msrb.mxu2 %v1304_v38  ;;  %1321 = vmatpush.bf16.msra.mxu3 %v1304_v38 }
 0x216   : > { %v908_v49 = vpop.f32.mrf.mxu1 }
 0x217   : > { %v919_v50 = vsel %vm918_vm10, %v908_v49, -inf }
 0x218   : > { %920 = vmax.xlane.f32.xlu0 %v919_v50 }
 0x21e   : > { %v910_v51 = vpop.f32.mrf.mxu1 }
 0x21f   : > { %v922_v52 = vsel %vm918_vm10, %v910_v51, -inf }
 0x220   : > { %923 = vmax.xlane.f32.xlu0 %v922_v52 }
 0x226   : > { %v913_v53 = vpop.f32.mrf.mxu1 }
 0x227   : > { %v925_v54 = vsel %vm918_vm10, %v913_v53, -inf }
 0x228   : > { %926 = vmax.xlane.f32.xlu1 %v925_v54 }
 0x22e   : > { %v915_v55 = vpop.f32.mrf.mxu1 }
 0x22f   : > { %v928_v56 = vsel %vm918_vm10, %v915_v55, -inf }
 0x230   : > { %929 = vmax.xlane.f32.xlu1 %v928_v56 }
 0x28b   : > { %v921_v60 = vpop.xlane.xlu0 %920 }
 0x28c   : > { %v931_v61 = vsub.f32 %v908_v49, %v921_v60  ;;  %v1303_v49 = vld [vmem:[%s1727_s3] sm:$0xff] }
 0x28d   : > { %1098 = vmatpush.bf16.msrb.mxu2 %v1303_v49  ;;  %1322 = vmatpush.bf16.msra.mxu3 %v1303_v49 }
 0x28e   : > { %v935_v63 = vpack.c.bf16 %v931_v61, %v931_v61 }
 0x290   : > { %v939_v0 = vunpack.c.l.bf16 %v935_v63 }
 0x292   : > { %v943_v1 = vmul.f32 1.442695, %v939_v0 }
 0x293   : > { %v924_v2 = vpop.xlane.xlu0 %923 }
 0x294   : > { %1363 = vpow2.f32 %v943_v1  ;;  %v932_v3 = vsub.f32 %v910_v51, %v924_v2 }
 0x296   : > { %v936_v4 = vpack.c.bf16 %v932_v3, %v932_v3 }
 0x298   : > { %v940_v5 = vunpack.c.l.bf16 %v936_v4 }
 0x29a   : > { %v1364_v32 = vpop.eup %1363  ;;  %v945_v62 = vmul.f32 1.442695, %v940_v5 }
 0x29b   : > { %v927_v6 = vpop.xlane.xlu1 %926  ;;  %v951_v7 = vpack.c.bf16 %v1364_v32, %v1364_v32 }
 0x29c   : > { %1365 = vpow2.f32 %v945_v62  ;;  %v933_v8 = vsub.f32 %v913_v53, %v927_v6 }
 0x29d   : > { %v955_v9 = vunpack.c.l.bf16 %v951_v7  ;;  %v975_v59 = vunpack.c.l.b16 %v951_v7 }
 0x29e   : > { %v937_v10 = vpack.c.bf16 %v933_v8, %v933_v8 }
 0x29f   : > { %v959_v11 = vsel %vm918_vm10, %v955_v9, 0.0 }
 0x2a0   : > { %v941_v12 = vunpack.c.l.bf16 %v937_v10  ;;  %960 = vadd.xlane.f32.xlu2 %v959_v11 }
 0x2a2   : > { %v1366_v13 = vpop.eup %1365  ;;  %v947_v14 = vmul.f32 1.442695, %v941_v12 }
 0x2a3   : > { %v952_v15 = vpack.c.bf16 %v1366_v13, %v1366_v13  ;;  %v930_v16 = vpop.xlane.xlu1 %929 }
 0x2a4   : > { %1367 = vpow2.f32 %v947_v14  ;;  %v934_v17 = vsub.f32 %v915_v55, %v930_v16  ;;  %v1016_v55 = vstv %s1485_s27 }
 0x2a5   : > { %v956_v18 = vunpack.c.l.bf16 %v952_v15  ;;  %v976_v20 = vunpack.c.l.b16 %v952_v15 }
 0x2a6   : > { %v938_v21 = vpack.c.bf16 %v934_v17, %v934_v17 }
 0x2a7   : > { %v962_v22 = vsel %vm918_vm10, %v956_v18, 0.0  ;;  %v979_v23 = vpack.c.b16 %v976_v20, %v975_v59 }
 0x2a8   : > { %v942_v24 = vunpack.c.l.bf16 %v938_v21  ;;  %963 = vadd.xlane.f32.xlu2 %v962_v22 }
 0x2a9   : > { %1258 = vmatmul.msk.bf16.vlgmr.msra.gmra.mxu2 %vm918_vm10, %v979_v23 }
 0x2aa   : > { %v1368_v27 = vpop.eup %1367  ;;  %v949_v31 = vmul.f32 1.442695, %v942_v24 }
 0x2ab   : > { %v953_v33 = vpack.c.bf16 %v1368_v27, %v1368_v27 }
 0x2ac   : > { %1369 = vpow2.f32 %v949_v31 }
 0x2ad   : > { %v957_v34 = vunpack.c.l.bf16 %v953_v33  ;;  %v977_v39 = vunpack.c.l.b16 %v953_v33 }
 0x2af   : > { %v965_v35 = vsel %vm918_vm10, %v957_v34, 0.0 }
 0x2b0   : > { %966 = vadd.xlane.f32.xlu0 %v965_v35 }
 0x2b2   : > { %v1370_v28 = vpop.eup %1369 }
 0x2b3   : > { %v954_v36 = vpack.c.bf16 %v1370_v28, %v1370_v28 }
 0x2b5   : > { %v958_v37 = vunpack.c.l.bf16 %v954_v36  ;;  %v978_v40 = vunpack.c.l.b16 %v954_v36 }
 0x2b7   : > { %v968_v41 = vsel %vm918_vm10, %v958_v37, 0.0  ;;  %v980_v42 = vpack.c.b16 %v978_v40, %v977_v39 }
 0x2b8   : > { %969 = vadd.xlane.f32.xlu1 %v968_v41 }
 0x2b9   : > { %1259 = vmatmul.msk.bf16.gmra.mxu2 %vm918_vm10, %v980_v42 }
 0x313   : > { %v961_v50 = vpop.xlane.xlu2 %960 }
 0x314   : > { %1371 = vrcp.f32 %v961_v50 }
 0x31a   : > { %v1372_v53 = vpop.eup %1371 }
 0x31b   : > { %v964_v51 = vpop.xlane.xlu2 %963  ;;  %v1017_v56 = vmul.f32 %v1372_v53, %v1016_v55 }
 0x31c   : > { %1373 = vrcp.f32 %v964_v51 }
 0x322   : > { %v1374_v54 = vpop.eup %1373 }
 0x323   : > { %v1018_v57 = vmul.f32 %v1374_v54, %v1016_v55  ;;  %v967_v61 = vpop.xlane.xlu0 %966 }
 0x324   : > { %1375 = vrcp.f32 %v967_v61 }
 0x32a   : > { %v1376_v2 = vpop.eup %1375 }
 0x32b   : > { %v970_v63 = vpop.xlane.xlu1 %969  ;;  %v1019_v4 = vmul.f32 %v1376_v2, %v1016_v55 }
 0x32c   : > { %v1002_v52 = vpop.f32.mrf.mxu2  ;;  %1377 = vrcp.f32 %v970_v63 }
 0x32d   : > { %v1021_v58 = vmul.f32 %v1017_v56, %v1002_v52 }
 0x332   : > { %v1378_v3 = vpop.eup %1377 }
 0x333   : > { %v1020_v5 = vmul.f32 %v1378_v3, %v1016_v55 }
 0x334   : > { %v1004_v19 = vpop.f32.mrf.mxu2 }
 0x335   : > { %v1022_v60 = vmul.f32 %v1018_v57, %v1004_v19 }
 0x337   : > { %v1025_v0 = vpack.c.bf16 %v1022_v60, %v1021_v58 }
 0x339   : > { %1099 = vmatmul.bf16.vlgmr.msrb.gmra.mxu2 %v1025_v0 }
 0x33c   : > { %v1007_v1 = vpop.f32.mrf.mxu2 }
 0x33d   : > { %v1023_v62 = vmul.f32 %v1019_v4, %v1007_v1 }
 0x344   : > { %v1009_v32 = vpop.f32.mrf.mxu2 }
 0x345   : > { %v1024_v6 = vmul.f32 %v1020_v5, %v1009_v32 }
 0x347   : > { %v1026_v7 = vpack.c.bf16 %v1024_v6, %v1023_v62 }
 0x349   : > { %1104 = vmatmul.bf16.vlgmr.msra.gmra.mxu3 %v1026_v7 }
 0x3bc   : > { %v1100_v8 = vpop.f32.mrf.mxu2 }
 0x3bd   : > { %v1110_v9 = vadd.f32 %v1100_v8, %v1648_v25 }
 0x3bf   : > { %1114 = vst.msk [vmem:[%s1495_s12] sm:$0xff] %vm847_vm9, %v1110_v9 }
 0x3c4   : > { %v1102_v10 = vpop.f32.mrf.mxu2 }
 0x3c5   : > { %v1111_v11 = vadd.f32 %v1102_v10, %v1650_v26 }
 0x3c7   : > { %1115 = vst.msk [vmem:[%s1495_s12 + $0x8] sm:$0xff] %vm847_vm9, %v1111_v11 }
 0x3cc   : > { %v1105_v12 = vpop.f32.mrf.mxu3 }
 0x3cd   : > { %v1112_v13 = vadd.f32 %v1105_v12, %v1655_v29 }
 0x3cf   : > { %1116 = vst.msk [vmem:[%s1495_s12 + $0x10] sm:$0xff] %vm847_vm9, %v1112_v13 }
 0x3d4   : > { %v1107_v14 = vpop.f32.mrf.mxu3 }
 0x3d5   : > { %v1113_v15 = vadd.f32 %v1107_v14, %v1657_v30 }
 0x3d7   : > { %1117 = vst.msk [vmem:[%s1495_s12 + $0x18] sm:$0xff] %vm847_vm9, %v1113_v15 }
 0x3d8 PF: > { %s16_s24 = sadd.s32 1, %s1417_s24   ;;  %s1730_s20 = smov %s1409_s22 }
 0x3d9   : > { %p13_p8 = scmp.ge.s32.totalorder %s16_s24, 10   ;;  %s1731_s21 = smov %s1413_s23 }
 0x3da   : > { %s1732_s22 = smov %s1735_s4  ;;  %s1733_s23 = smov %s1739_s25 }
 0x3db   :  { %15 = sbr.rel (!%p13_p8) target bundleno = 3 (0x3), region = 78 }

</bundles_post_ra>
